<compile_context>
chip_gen: v7x
topology: tpu7x:2x2x1
jax: 0.10.0
libtpu: 0.0.40
codegen_flags: <defaults>
</compile_context>

<pallas_src>
import functools

import jax
import jax.numpy as jnp
from jax.experimental import pallas as pl
from jax.experimental.pallas import tpu as pltpu

EMBED_DIMS = 32                      # small test-size embed_dims
SHARED_REG_FCS = 2
GROUP_REG_DIMS = (2, 1, 3, 2, 2)     # per-task regression dims, concat -> 10
NUM_TASKS = len(GROUP_REG_DIMS)
TOTAL_REG_DIM = sum(GROUP_REG_DIMS)  # 10 -- kernel output width (no padding)


def _round_up(x, m):
    return ((x + m - 1) // m) * m


def _reg_layer_kernel(x_ref, wsh_ref, bsh_ref, w1_ref, b1_ref, w2_ref, b2_ref,
                      o_ref, *, embed_dims, shared_fcs):
    """One row-tile of tokens through the whole head.

    wsh/bsh : shared reg_branch weights stacked along axis 0.
    w1/b1   : task-head first Linear, column-concatenated over tasks.
    w2/b2   : task-head second Linear, block-diagonal, TOTAL_REG_DIM columns.
    """
    cd = wsh_ref.dtype  # MXU input dtype (bf16 by default); accum stays f32.

    # Carry the activation in compute dtype; do bias/ReLU in the f32
    # accumulator of each dot, then cast once for the next dot.
    h = x_ref[...].astype(cd)

    # shared reg_branch: (Linear -> ReLU -> Dropout(p=0, identity)) * shared_fcs
    for l in range(shared_fcs):
        w = wsh_ref[l * embed_dims:(l + 1) * embed_dims, :]
        b = bsh_ref[l:l + 1, :]
        z = jnp.dot(h, w, preferred_element_type=jnp.float32) + b
        h = jnp.maximum(z, 0.0).astype(cd)

    # fused task heads: one matmul for all first Linears (+ReLU), one matmul
    # against the block-diagonal second Linear -> (tile_m, TOTAL_REG_DIM).
    t = jnp.maximum(
        jnp.dot(h, w1_ref[...], preferred_element_type=jnp.float32)
        + b1_ref[...], 0.0).astype(cd)
    y = jnp.dot(t, w2_ref[...],
                preferred_element_type=jnp.float32) + b2_ref[...]
    o_ref[...] = y.astype(o_ref.dtype)


def pack_params(params, compute_dtype=jnp.bfloat16):
    """Pack the per-layer params into 6 kernel arrays."""
    E = EMBED_DIMS
    wsh = jnp.concatenate([w for (w, _) in params["shared"]],
                          axis=0).astype(compute_dtype)          # (FCS*E, E)
    bsh = jnp.concatenate([b for (_, b) in params["shared"]],
                          axis=0).astype(jnp.float32)            # (FCS, E)
    w1 = jnp.concatenate([t[0] for t in params["tasks"]],
                         axis=1).astype(compute_dtype)           # (E, T*E)
    b1 = jnp.concatenate([t[1] for t in params["tasks"]],
                         axis=1).astype(jnp.float32)             # (1, T*E)
    # block-diagonal second-layer weight, true (un-padded) output width.
    w2 = jnp.zeros((NUM_TASKS * E, TOTAL_REG_DIM), jnp.float32)
    b2 = jnp.zeros((1, TOTAL_REG_DIM), jnp.float32)
    col = 0
    for t_idx, (_, _, w2_t, b2_t) in enumerate(params["tasks"]):
        d = w2_t.shape[1]
        w2 = w2.at[t_idx * E:(t_idx + 1) * E, col:col + d].set(w2_t)
        b2 = b2.at[:, col:col + d].set(b2_t)
        col += d
    return wsh, bsh, w1, b1, w2.astype(compute_dtype), b2


def reg_layer_pallas(x, params, *, tile_m=4096, compute_dtype=jnp.bfloat16):
    """x: (..., EMBED_DIMS). Returns (..., TOTAL_REG_DIM)."""
    lead_shape = x.shape[:-1]
    E = x.shape[-1]
    assert E == EMBED_DIMS
    x2 = x.reshape(-1, E)
    n = x2.shape[0]

    # Clamp the row tile to the (8-aligned) token count and pad rows so the
    # grid divides evenly -- no divisibility restriction on the caller.
    n8 = _round_up(max(n, 1), 8)
    tile_m = max(8, min(tile_m, n8))
    if n8 >= 16:
        # Ensure >= 2 grid steps so both TensorCores are used on v7x.
        tile_m = min(tile_m, _round_up(pl.cdiv(n8, 2), 8))
    tile_m = _round_up(tile_m, 8)
    n_pad = _round_up(n, tile_m)
    if n_pad != n:
        x2 = jnp.pad(x2, ((0, n_pad - n), (0, 0)))

    wsh, bsh, w1, b1, w2, b2 = pack_params(params, compute_dtype)

    def const_spec(a):
        # full-array block, fetched once (constant block index).
        return pl.BlockSpec(a.shape, lambda i: (0, 0))

    kernel = functools.partial(_reg_layer_kernel,
                               embed_dims=E, shared_fcs=SHARED_REG_FCS)

    out = pl.pallas_call(
        kernel,
        out_shape=jax.ShapeDtypeStruct((n_pad, TOTAL_REG_DIM), x.dtype),
        grid_spec=pltpu.PrefetchScalarGridSpec(
            num_scalar_prefetch=0,
            grid=(n_pad // tile_m,),
            in_specs=[pl.BlockSpec((tile_m, E), lambda i: (i, 0)),
                      const_spec(wsh), const_spec(bsh),
                      const_spec(w1), const_spec(b1),
                      const_spec(w2), const_spec(b2)],
            out_specs=pl.BlockSpec((tile_m, TOTAL_REG_DIM), lambda i: (i, 0)),
        ),
        compiler_params=pltpu.CompilerParams(
            dimension_semantics=("parallel",)),
    )(x2, wsh, bsh, w1, b1, w2, b2)

    # Output already has the true column width; only padded rows (if any)
    # are dropped here.
    if n_pad != n:
        out = out[:n]
    return out.reshape(*lead_shape, TOTAL_REG_DIM)


def init_params(key, embed_dims=EMBED_DIMS):
    """Deterministic PyTorch-Linear-style init (uniform +-1/sqrt(fan_in))."""
    def linear(k, fan_in, fan_out):
        kw, kb = jax.random.split(k)
        bound = 1.0 / jnp.sqrt(fan_in)
        w = jax.random.uniform(kw, (fan_in, fan_out), jnp.float32,
                               minval=-bound, maxval=bound)
        b = jax.random.uniform(kb, (1, fan_out), jnp.float32,
                               minval=-bound, maxval=bound)
        return w, b

    keys = jax.random.split(key, SHARED_REG_FCS + 2 * NUM_TASKS)
    shared = [linear(keys[i], embed_dims, embed_dims)
              for i in range(SHARED_REG_FCS)]
    tasks = []
    ki = SHARED_REG_FCS
    for reg_dim in GROUP_REG_DIMS:
        w1, b1 = linear(keys[ki], embed_dims, embed_dims)
        w2, b2 = linear(keys[ki + 1], embed_dims, reg_dim)
        tasks.append((w1, b1, w2, b2))
        ki += 2
    return {"shared": shared, "tasks": tasks}


def reg_layer_reference(x, params):
    """Pure-JAX f32 reference of the PyTorch forward, for correctness check."""
    h = x.astype(jnp.float32)
    for (w, b) in params["shared"]:
        h = jnp.maximum(h @ w + b, 0.0)
    outs = []
    for (w1, b1, w2, b2) in params["tasks"]:
        t = jnp.maximum(h @ w1 + b1, 0.0)
        outs.append(t @ w2 + b2)
    return jnp.concatenate(outs, axis=-1).astype(x.dtype)


if __name__ == "__main__":
    key = jax.random.PRNGKey(0)
    kx, kp = jax.random.split(key)

    # Small shapes consistent with the module: (batch=2, num_query=8, E=32).
    x = jax.random.normal(kx, (2, 8, EMBED_DIMS), dtype=jnp.float32)
    params = init_params(kp)

    out = reg_layer_pallas(x, params)          # bf16 MXU inputs, f32 accum
    out = jax.block_until_ready(out)

    ref = reg_layer_reference(x.reshape(-1, EMBED_DIMS), params)
    ref = ref.reshape(2, 8, TOTAL_REG_DIM)
    assert out.shape == (2, 8, TOTAL_REG_DIM)
    # tolerance loosened for bf16 dot inputs (f32 accumulation kept).
    assert jnp.allclose(out, ref, atol=5e-2, rtol=5e-2), (
        float(jnp.max(jnp.abs(out - ref))))

    print("KERNEL_OK")
</pallas_src>

<mosaic_0001>
module attributes {stable_mosaic.version = 11 : i64} {
  func.func @_reg_layer_kernel(%arg0: i32, %arg1: memref<8x32xf32, #tpu.memory_space<vmem>>, %arg2: memref<64x32xbf16, #tpu.memory_space<vmem>>, %arg3: memref<2x32xf32, #tpu.memory_space<vmem>>, %arg4: memref<32x160xbf16, #tpu.memory_space<vmem>>, %arg5: memref<1x160xf32, #tpu.memory_space<vmem>>, %arg6: memref<160x10xbf16, #tpu.memory_space<vmem>>, %arg7: memref<1x10xf32, #tpu.memory_space<vmem>>, %arg8: memref<8x10xf32, #tpu.memory_space<vmem>>) attributes {dimension_semantics = [#tpu.dimension_semantics<parallel>], iteration_bounds = array<i64: 2>, scalar_prefetch = 0 : i64, scratch_operands = 0 : i64, tpu.core_type = #tpu.core_type<tc>, window_params = [{transform_indices = @transform_0, window_bounds = array<i64: 8, 32>}, {pipeline_mode = #tpu.pipeline_mode<synchronous>, transform_indices = @transform_1, window_bounds = array<i64: 64, 32>}, {pipeline_mode = #tpu.pipeline_mode<synchronous>, transform_indices = @transform_2, window_bounds = array<i64: 2, 32>}, {pipeline_mode = #tpu.pipeline_mode<synchronous>, transform_indices = @transform_3, window_bounds = array<i64: 32, 160>}, {pipeline_mode = #tpu.pipeline_mode<synchronous>, transform_indices = @transform_4, window_bounds = array<i64: 1, 160>}, {pipeline_mode = #tpu.pipeline_mode<synchronous>, transform_indices = @transform_5, window_bounds = array<i64: 160, 10>}, {pipeline_mode = #tpu.pipeline_mode<synchronous>, transform_indices = @transform_6, window_bounds = array<i64: 1, 10>}, {transform_indices = @transform_7, window_bounds = array<i64: 8, 10>}]} {
    %c0 = arith.constant 0 : index
    %c0_0 = arith.constant 0 : index
    %0 = vector.load %arg1[%c0, %c0_0] : memref<8x32xf32, #tpu.memory_space<vmem>>, vector<8x32xf32>
    %1 = arith.truncf %0 : vector<8x32xf32> to vector<8x32xbf16>
    %c0_1 = arith.constant 0 : index
    %c0_2 = arith.constant 0 : index
    %2 = vector.load %arg2[%c0_1, %c0_2] : memref<64x32xbf16, #tpu.memory_space<vmem>>, vector<32x32xbf16>
    %c0_3 = arith.constant 0 : index
    %c0_4 = arith.constant 0 : index
    %3 = vector.load %arg3[%c0_3, %c0_4] : memref<2x32xf32, #tpu.memory_space<vmem>>, vector<1x32xf32>
    %cst = arith.constant dense<0.000000e+00> : vector<8x32xf32>
    %4 = tpu.matmul %1, %2, %cst {dimension_numbers = #tpu.dot_dimension_numbers<[1], [0], [0], [1], [0, 0, 1, 1], [], []>} : vector<8x32xbf16>, vector<32x32xbf16>, vector<8x32xf32> -> vector<8x32xf32>
    %5 = vector.broadcast %3 : vector<1x32xf32> to vector<8x32xf32>
    %6 = arith.addf %4, %5 : vector<8x32xf32>
    %cst_5 = arith.constant 0.000000e+00 : f32
    %7 = vector.broadcast %cst_5 : f32 to vector<8x32xf32>
    %8 = arith.maximumf %6, %7 : vector<8x32xf32>
    %9 = arith.truncf %8 : vector<8x32xf32> to vector<8x32xbf16>
    %c32 = arith.constant 32 : index
    %c0_6 = arith.constant 0 : index
    %10 = vector.load %arg2[%c32, %c0_6] : memref<64x32xbf16, #tpu.memory_space<vmem>>, vector<32x32xbf16>
    %c1 = arith.constant 1 : index
    %c0_7 = arith.constant 0 : index
    %11 = vector.load %arg3[%c1, %c0_7] : memref<2x32xf32, #tpu.memory_space<vmem>>, vector<1x32xf32>
    %cst_8 = arith.constant dense<0.000000e+00> : vector<8x32xf32>
    %12 = tpu.matmul %9, %10, %cst_8 {dimension_numbers = #tpu.dot_dimension_numbers<[1], [0], [0], [1], [0, 0, 1, 1], [], []>} : vector<8x32xbf16>, vector<32x32xbf16>, vector<8x32xf32> -> vector<8x32xf32>
    %13 = vector.broadcast %11 : vector<1x32xf32> to vector<8x32xf32>
    %14 = arith.addf %12, %13 : vector<8x32xf32>
    %cst_9 = arith.constant 0.000000e+00 : f32
    %15 = vector.broadcast %cst_9 : f32 to vector<8x32xf32>
    %16 = arith.maximumf %14, %15 : vector<8x32xf32>
    %17 = arith.truncf %16 : vector<8x32xf32> to vector<8x32xbf16>
    %c0_10 = arith.constant 0 : index
    %c0_11 = arith.constant 0 : index
    %18 = vector.load %arg4[%c0_10, %c0_11] : memref<32x160xbf16, #tpu.memory_space<vmem>>, vector<32x160xbf16>
    %cst_12 = arith.constant dense<0.000000e+00> : vector<8x160xf32>
    %19 = tpu.matmul %17, %18, %cst_12 {dimension_numbers = #tpu.dot_dimension_numbers<[1], [0], [0], [1], [0, 0, 1, 1], [], []>} : vector<8x32xbf16>, vector<32x160xbf16>, vector<8x160xf32> -> vector<8x160xf32>
    %c0_13 = arith.constant 0 : index
    %c0_14 = arith.constant 0 : index
    %20 = vector.load %arg5[%c0_13, %c0_14] : memref<1x160xf32, #tpu.memory_space<vmem>>, vector<1x160xf32>
    %21 = vector.broadcast %20 : vector<1x160xf32> to vector<8x160xf32>
    %22 = arith.addf %19, %21 : vector<8x160xf32>
    %cst_15 = arith.constant 0.000000e+00 : f32
    %23 = vector.broadcast %cst_15 : f32 to vector<8x160xf32>
    %24 = arith.maximumf %22, %23 : vector<8x160xf32>
    %25 = arith.truncf %24 : vector<8x160xf32> to vector<8x160xbf16>
    %c0_16 = arith.constant 0 : index
    %c0_17 = arith.constant 0 : index
    %26 = vector.load %arg6[%c0_16, %c0_17] : memref<160x10xbf16, #tpu.memory_space<vmem>>, vector<160x10xbf16>
    %cst_18 = arith.constant dense<0.000000e+00> : vector<8x10xf32>
    %27 = tpu.matmul %25, %26, %cst_18 {dimension_numbers = #tpu.dot_dimension_numbers<[1], [0], [0], [1], [0, 0, 1, 1], [], []>} : vector<8x160xbf16>, vector<160x10xbf16>, vector<8x10xf32> -> vector<8x10xf32>
    %c0_19 = arith.constant 0 : index
    %c0_20 = arith.constant 0 : index
    %28 = vector.load %arg7[%c0_19, %c0_20] : memref<1x10xf32, #tpu.memory_space<vmem>>, vector<1x10xf32>
    %29 = vector.broadcast %28 : vector<1x10xf32> to vector<8x10xf32>
    %30 = arith.addf %27, %29 : vector<8x10xf32>
    %c0_21 = arith.constant 0 : index
    %c0_22 = arith.constant 0 : index
    %31 = vector.load %arg8[%c0_21, %c0_22] : memref<8x10xf32, #tpu.memory_space<vmem>>, vector<8x10xf32>
    tpu.vector_store %arg8[%c0_21, %c0_22], %30 {strides = array<i32>} : memref<8x10xf32, #tpu.memory_space<vmem>>, vector<8x10xf32>,
    return
  }
  func.func @transform_0(%arg0: i32) -> (i32, i32) {
    %c0_i32 = arith.constant 0 : i32
    %c0_i32_0 = arith.constant 0 : i32
    return %arg0, %c0_i32 : i32, i32
  }
  func.func @transform_1(%arg0: i32) -> (i32, i32) {
    %c0_i32 = arith.constant 0 : i32
    %c0_i32_0 = arith.constant 0 : i32
    %c0_i32_1 = arith.constant 0 : i32
    return %c0_i32, %c0_i32_0 : i32, i32
  }
  func.func @transform_2(%arg0: i32) -> (i32, i32) {
    %c0_i32 = arith.constant 0 : i32
    %c0_i32_0 = arith.constant 0 : i32
    %c0_i32_1 = arith.constant 0 : i32
    return %c0_i32, %c0_i32_0 : i32, i32
  }
  func.func @transform_3(%arg0: i32) -> (i32, i32) {
    %c0_i32 = arith.constant 0 : i32
    %c0_i32_0 = arith.constant 0 : i32
    %c0_i32_1 = arith.constant 0 : i32
    return %c0_i32, %c0_i32_0 : i32, i32
  }
  func.func @transform_4(%arg0: i32) -> (i32, i32) {
    %c0_i32 = arith.constant 0 : i32
    %c0_i32_0 = arith.constant 0 : i32
    %c0_i32_1 = arith.constant 0 : i32
    return %c0_i32, %c0_i32_0 : i32, i32
  }
  func.func @transform_5(%arg0: i32) -> (i32, i32) {
    %c0_i32 = arith.constant 0 : i32
    %c0_i32_0 = arith.constant 0 : i32
    %c0_i32_1 = arith.constant 0 : i32
    return %c0_i32, %c0_i32_0 : i32, i32
  }
  func.func @transform_6(%arg0: i32) -> (i32, i32) {
    %c0_i32 = arith.constant 0 : i32
    %c0_i32_0 = arith.constant 0 : i32
    %c0_i32_1 = arith.constant 0 : i32
    return %c0_i32, %c0_i32_0 : i32, i32
  }
  func.func @transform_7(%arg0: i32) -> (i32, i32) {
    %c0_i32 = arith.constant 0 : i32
    %c0_i32_0 = arith.constant 0 : i32
    return %arg0, %c0_i32 : i32, i32
  }
}

</mosaic_0001>

<bundles_post_ra>
// kernel: tpu_custom_call.1
= control target key start
LH: loop header
LB: loop body
LE: loop exit
PB: predicated region body
PF: predicated region fallthrough
CT: control target
= control target key end

     0   :  { %12 = vsyncpa [#allocation3], 0  ;;  %s1096_s0 = inlined_call_operand.vmem [shape: f32[16,32], index: 0, kind: input, shape index: {}]   ;;  %s1097_s1 = inlined_call_operand.vmem [shape: bf16[64,32], index: 1, kind: input, shape index: {}]   ;;  %s1098_s2 = inlined_call_operand.vmem [shape: f32[2,32], index: 2, kind: input, shape index: {}]   ;;  %s1099_s3 = inlined_call_operand.vmem [shape: bf16[32,160], index: 3, kind: input, shape index: {}]   ;;  %s1100_s4 = inlined_call_operand.vmem [shape: f32[1,160], index: 4, kind: input, shape index: {}]   ;;  %s1101_s5 = inlined_call_operand.vmem [shape: bf16[160,10], index: 5, kind: input, shape index: {}]   ;;  %s1102_s6 = inlined_call_operand.vmem [shape: f32[1,10], index: 6, kind: input, shape index: {}]   ;;  %s1103_s7 = inlined_call_operand.hbm [shape: f32[16,10], index: 7, kind: output, shape index: {}]  }
   0x1   :  { %14 = vsyncpa [#allocation3 + $0x1], 0  ;;  %s926_s24 = smov 0   ;;  %s928_s25 = smov 0  }
   0x2   :  { %s930_s26 = smov 0   ;;  %s932_s27 = smov 0  }
   0x3 LB: > { %s947_s28 = sadd.s32 4294967295, %s880_s27   ;;  %s699_s29 = sadd.s32 4294967294, %s880_s27   ;;  %s880_s27 = sphi %s932_s27, %s1109_s27   ;;  %s876_s26 = sphi %s930_s26, %s1108_s26   ;;  %s872_s25 = sphi %s928_s25, %s1107_s25   ;;  %s868_s24 = sphi %s926_s24, %s1106_s24  }
   0x4   : > { %s951_s30 = sadd.s32 1, %s880_s27   ;;  %s179_s8 = sadd.s32 1, %s876_s26 }
   0x5   : > { %s176_s9 = ssub.s32 %s880_s27, %s951_s30  ;;  %p189_p0 = scmp.ne.s32.totalorder %s876_s26, %s872_s25 }
   0x6   : > { %p177_p1 = scmp.eq.s32.totalorder %s176_s9, 0  ;;  %p190_p2 = scmp.eq.s32.totalorder %s947_s28, 1 }
   0x7   : > { %p195_p3 = scmp.ne.s32.totalorder %s872_s25, %s868_s24  ;;  %p196_p4 = scmp.eq.s32.totalorder %s699_s29, 1 }
   0x8   : > { %s962_s10 = scalar_select %p177_p1, %s876_s26, %s179_s8  }
   0x9   : > { %p964_p5 = por %p190_p2, %p189_p0  ;;  %p968_p6 = por %p196_p4, %p195_p3 }
   0xa   : > { %p702_p7 = scmp.ge.s32.totalorder %s880_s27, 1  ;;  %p239_p8 = scmp.lt.s32.totalorder %s880_s27, 3 }
   0xc   : > { %p240_p9 = pnand %p702_p7, %p239_p8 }
   0xd   : > { %v798_v0 = vld [vmem:[%s1097_s1] sm:$0xff] (!%p240_p9)   ;;  %v882_v1 = vmov (!%p240_p9), 0.0   ;;  %v799_v2 = vld [vmem:[%s1097_s1 + $0x8] sm:$0xff] (!%p240_p9)   ;;  %vm883_vm0 = vmmov (!%p240_p9), 0   ;;  %p270_p10 = scmp.lt.s32.totalorder (!%p240_p9), %s947_s28, 1  ;;  %v800_v3 = vld [vmem:[%s1097_s1 + $0x10] sm:$0xff] (!%p240_p9)   ;;  %v416_v38 = vlaneseq (!%p240_p9) }
   0xe   : > { %243 = sbr.rel (%p240_p9) target bundleno = 912 (0x390), region = 48  ;;  %740 = vmatprep.subr.bf16.mxu0 (!%p240_p9), %v882_v1  ;;  %744 = vmatprep.mubr.msk.bf16.mxu0 (!%p240_p9), %vm883_vm0, %v882_v1  ;;  %vm298_vm1 = vcmask (!%p240_p9), 261120   ;;  %v801_v6 = vld [vmem:[%s1097_s1 + $0x18] sm:$0xff] (!%p240_p9)   ;;  %v804_v7 = vld [vmem:[%s1099_s3 + $0x4] ss:$8 sps:$4 sm:$0xff] (!%p240_p9)   ;;  %v884_v19 = vmov (!%p240_p9), 0  }
   0xf   : > { %741 = vmatpush3.bf16.msra.mxu0 (!%p240_p9), %v798_v0  ;;  %v705_v8 = vld [vmem:[%s1098_s2] ss:$0 sm:$0xff] (!%p240_p9)  ;;  %v807_v17 = vld [vmem:[%s1099_s3 + $0x14] ss:$8 sps:$4 sm:$0xff] (!%p240_p9)   ;;  %v805_v18 = vld [vmem:[%s1099_s3 + $0x10] ss:$8 sps:$4 sm:$0xff] (!%p240_p9)   ;;  %584 = vmatprep.subr.bf16.mxu1 (!%p240_p9), %v884_v19 }
  0x10   : > { %742 = vmatprep.subr.bf16.mxu0 (!%p240_p9), %v882_v1  ;;  %v802_v15 = vld [vmem:[%s1099_s3] ss:$8 sps:$4 sm:$0xff] (!%p240_p9)   ;;  %v810_v22 = vld [vmem:[%s1101_s5 + $0x10] sm:$0xff] (!%p240_p9)   ;;  %v811_v23 = vld [vmem:[%s1101_s5 + $0x18] sm:$0xff] (!%p240_p9)   ;;  %v417_v39 = vshrl.u32 (!%p240_p9), %v416_v38, 7  ;;  %s731_s22 = sshll.u32 (!%p240_p9), %s947_s28, 7 }
  0x11   : > { %v808_v20 = vld [vmem:[%s1101_s5] sm:$0xff] (!%p240_p9)   ;;  %v809_v21 = vld [vmem:[%s1101_s5 + $0x8] sm:$0xff] (!%p240_p9)   ;;  %v814_v26 = vld [vmem:[%s1101_s5 + $0x30] sm:$0xff] (!%p240_p9)   ;;  %vm624_vm2 = vcmask (!%p240_p9), 80896   ;;  %s1054_s13 = scalar_lea.hbm (!%p240_p9), %s1103_s7, %s731_s22  ;;  %s885_s15 = smov (!%p240_p9), [#allocation2]  }
  0x12   : > { %585 = vmatpush1.bf16.msra.mxu1 (!%p240_p9), %v808_v20  ;;  %v812_v24 = vld [vmem:[%s1101_s5 + $0x20] sm:$0xff] (!%p240_p9)   ;;  %v813_v25 = vld [vmem:[%s1101_s5 + $0x28] sm:$0xff] (!%p240_p9)   ;;  %v815_v27 = vld [vmem:[%s1101_s5 + $0x38] sm:$0xff] (!%p240_p9)   ;;  %v418_v40 = vsub.s32 (!%p240_p9), 0, %v417_v39  ;;  %v422_v42 = vsub.s32 (!%p240_p9), 1, %v417_v39  ;;  %s822_s16 = sshll.u32 (!%p240_p9), %s885_s15, 4  ;;  %s823_s16 = int_to_ptr.vmem [resolvable:$false] %s822_s16 }
  0x13   : > { %743 = vmatpush3.bf16.msra.mxu0 (!%p240_p9), %v799_v2  ;;  %586 = vmatprep.subr.bf16.mxu1 (!%p240_p9), %v884_v19  ;;  %v709_v28 = vld [vmem:[%s1098_s2 + $0x1] ss:$0 sm:$0xff] (!%p240_p9)  ;;  %v817_v37 = vld [vmem:[%s1101_s5 + $0x48] sm:$0xff] (!%p240_p9)   ;;  %v718_v55 = vld [vmem:[%s1102_s6] ss:$0 sm:$0xff] (!%p240_p9) }
  0x14   : > { %748 = vmatprep.subr.bf16.mxu0 (!%p240_p9), %v882_v1  ;;  %v816_v36 = vld [vmem:[%s1101_s5 + $0x40] sm:$0xff] (!%p240_p9)  }
  0x15   : > { %s271_s17 = scalar_select %p270_p10, %s947_s28, 1  ;;  %v414_v41 = vld [vmem:[%s1100_s4] sm:$0x3] }
  0x16   : > { %587 = vmatpush1.bf16.msra.mxu1 %v809_v21  ;;  %v419_v43 = vrot.slane %v414_v41, %v418_v40  ;;  %v423_v44 = vrot.slane %v414_v41, %v422_v42 }
  0x17   : > { %s704_s18 = sshll.u32 %s271_s17, 3  ;;  %588 = vmatprep.subr.bf16.mxu1 %v884_v19  ;;  %s824_s17 = scalar_lea.vmem %s823_s16, 256 }
  0x18   : > { %s273_s23 = scalar_lea.vmem %s1096_s0, %s704_s18  ;;  %s267_s18 = sand.u32 1, %s872_s25  }
  0x19   : > { %v275_v4 = vld [vmem:[%s273_s23] sm:$0xff]  ;;  %s703_s19 = sshll.u32 %s267_s18, 3  ;;  %s627_s28 = scalar_lea.sflag [#allocation3], %s267_s18 }
  0x1a   : > { %v276_v5 = vpack.c.bf16 %v275_v4, %v275_v4  ;;  %589 = vmatpush1.bf16.msra.mxu1 %v810_v22  ;;  %s269_s23 = scalar_lea.vmem [#allocation2], %s703_s19 }
  0x1b   : > { %590 = vmatprep.subr.bf16.mxu1 %v884_v19  ;;  %s640_s29 = sshll.u32 %s269_s23, 4  ;;  %s1056_s29 = int_to_ptr.vmem [resolvable:$true] %s640_s29 }
  0x1c   : > { %745 = vmatmul.mubr.msk.bf16.vlgmr.msra.gmra.mrb[0].mxu0 %vm298_vm1, %v276_v5  ;;  %s818_s14 = scalar_lea.vmem %s1056_s29, 128  ;;  %p825_p0 = scmp.lt.s32.totalorder %s1056_s29, %s823_s16 }
  0x1d   : > { %749 = vmatpush3.bf16.msra.mxu0 %v800_v3  ;;  %752 = vmatprep.mubr.msk.bf16.mxu0 %vm883_vm0, %v882_v1  ;;  %p819_p11 = scmp.ne.s32.totalorder %s1056_s29, %s818_s14  ;;  %p826_p1 = scmp.lt.s32.totalorder %s824_s17, %s818_s14 }
  0x1e   : > { %750 = vmatprep.subr.bf16.mxu0 %v882_v1  ;;  %591 = vmatpush1.bf16.msra.mxu1 %v811_v23 }
  0x1f   : > { %592 = vmatprep.subr.bf16.mxu1 %v884_v19  ;;  %p820_p12 = pnand %p819_p11, %p964_p5  ;;  %p827_p2 = por %p826_p1, %p825_p0 }
  0x21   : > { %751 = vmatpush3.bf16.msra.mxu0 %v801_v6  ;;  %p821_p13 = pneg %p820_p12 }
  0x22   : > { %449 = vmatprep.subr.bf16.mxu0 %v804_v7  ;;  %593 = vmatpush1.bf16.msra.mxu1 %v812_v24 }
  0x23   : > { %594 = vmatprep.subr.bf16.mxu1 %v884_v19  ;;  %p828_p3 = pnand %p827_p2, %p821_p13 }
  0x26   : > { %595 = vmatpush1.bf16.msra.mxu1 %v813_v25 }
  0x27   : > { %596 = vmatprep.subr.bf16.mxu1 %v884_v19 }
  0x2a   : > { %597 = vmatpush1.bf16.msra.mxu1 %v814_v26 }
  0x2b   : > { %598 = vmatprep.subr.bf16.mxu1 %v884_v19 }
  0x2e   : > { %599 = vmatpush1.bf16.msra.mxu1 %v815_v27 }
  0x2f   : > { %600 = vmatprep.subr.bf16.mxu1 %v884_v19 }
  0x32   : > { %601 = vmatpush1.bf16.msra.mxu1 %v816_v36 }
  0x33   : > { %602 = vmatprep.subr.bf16.mxu1 %v884_v19 }
  0x36   : > { %603 = vmatpush1.bf16.msra.mxu1 %v817_v37 }
  0xef   : > { %v336_v9 = vpop.f32.mrb[0].mxu0 }
  0xf0   : > { %v337_v10 = vadd.f32 %v705_v8, %v336_v9  ;;  %v746_v11 = vpop.f32.mrb[1].mxu0 }
  0xf1   : > { %v339_v12 = vpop.f32.mrb[2].mxu0 }
  0xf2   : > { %v342_v13 = vmax.f32 %v337_v10, 0.0  ;;  %v747_v14 = vpop.f32.mrb[3].mxu0 }
  0xf4   : > { %v343_v16 = vpack.c.bf16 %v342_v13, %v342_v13 }
  0xf6   : > { %753 = vmatmul.mubr.msk.bf16.vlgmr.msra.gmra.mrb[4].mxu0 %vm298_vm1, %v343_v16 }
  0xf7   : > { %450 = vmatpush1.bf16.msra.mxu0 %v802_v15  ;;  %481 = vmatprep.mubr.bf16.mxu0 %v884_v19 }
  0xf8   : > { %451 = vmatprep.subr.bf16.mxu0 %v807_v17 }
  0xfb   : > { %452 = vmatpush1.bf16.msra.mxu0 %v805_v18 }
 0x1c9   : > { %v402_v29 = vpop.f32.mrb[4].mxu0 }
 0x1ca   : > { %v403_v30 = vadd.f32 %v709_v28, %v402_v29  ;;  %v754_v31 = vpop.f32.mrb[5].mxu0 }
 0x1cb   : > { %v405_v32 = vpop.f32.mrb[6].mxu0 }
 0x1cc   : > { %v408_v33 = vmax.f32 %v403_v30, 0.0  ;;  %v755_v34 = vpop.f32.mrb[7].mxu0 }
 0x1ce   : > { %v409_v35 = vpack.c.bf16 %v408_v33, %v408_v33 }
 0x1d0   : > { %717 = vmatmul.mubr.msk.bf16.vlgmr.msra.gmra.mrb[8].mxu0 %vm298_vm1, %v409_v35 }
 0x2a3   : > { %v483_v45 = vpop.f32.mrb[8].mxu0 }
 0x2a4   : > { %v484_v46 = vadd.f32 %v483_v45, %v419_v43  ;;  %v485_v47 = vpop.f32.mrb[9].mxu0 }
 0x2a5   : > { %v486_v48 = vadd.f32 %v485_v47, %v423_v44  ;;  %v487_v49 = vpop.f32.mrb[10].mxu0 }
 0x2a6   : > { %v490_v50 = vmax.f32 %v484_v46, 0.0  ;;  %v488_v51 = vpop.f32.mrb[11].mxu0 }
 0x2a7   : > { %v491_v52 = vmax.f32 %v486_v48, 0.0 }
 0x2a8   : > { %v492_v54 = vpack.c.bf16 %v490_v50, %v490_v50 }
 0x2a9   : > { %v493_v53 = vpack.c.bf16 %v491_v52, %v491_v52 }
 0x2ab   : > { %729 = vmatprep.mubr.msk.bf16.mxu1 %vm298_vm1, %v493_v53 }
 0x2ac   : > { %617 = vmatmul.mubr.bf16.vlgmr.msra.gmra.mrb[0].mxu1 %v492_v54 }
 0x37f   : > { %v618_v56 = vpop.f32.mrb[0].mxu1 }
 0x380   : > { %v619_v57 = vadd.f32 %v718_v55, %v618_v56  ;;  %v620_v58 = vpop.f32.mrb[1].mxu1 }
 0x381   : > { %v621_v59 = vpop.f32.mrb[2].mxu1 }
 0x382   : > { %v622_v60 = vpop.f32.mrb[3].mxu1  ;;  %625 = vst.msk [vmem:[%s269_s23] sm:$0xff] %vm624_vm2, %v619_v57 }
 0x383   : > { %831 = shalt.err (!%p828_p3)
}
 0x384   : > { %s832_s18 = scalar_lea.hbm %s1054_s13, 128  ;;  %s836_s21 = scalar_lea.hbm %s1103_s7, 256 }
 0x385   : > { %p833_p4 = scmp.ne.s32.totalorder %s1054_s13, %s832_s18  ;;  %p837_p9 = scmp.lt.u32.totalorder %s1054_s13, %s1103_s7 }
 0x386   : > { %p838_p10 = scmp.lt.u32.totalorder %s836_s21, %s832_s18  ;;  %p840_p12 = scmp.lt.u32.totalorder %s832_s18, %s1054_s13 }
 0x387   : > { %p834_p7 = pnand %p833_p4, %p964_p5 }
 0x388   : > { %p839_p11 = por %p838_p10, %p837_p9 }
 0x389   : > { %p835_p8 = pneg %p834_p7 }
 0x38a   : > { %p841_p13 = por %p840_p12, %p839_p11 }
 0x38c   : > { %p842_p0 = pnand %p841_p13, %p835_p8 }
 0x38e   : > { %845 = shalt.err (!%p842_p0)
}
 0x38f   : > { %756 = dma.vmem_to_hbm [thread:$0]  (%p964_p5), %s1056_s29, 128, %s1054_s13, %s627_s28  }
 0x390 PF: > { %p762_p1 = scmp.ge.s32.totalorder %s880_s27, 2  ;;  %s652_s8 = sand.u32 1, %s868_s24  }
 0x391   : > { %s653_s9 = scalar_lea.sflag [#allocation3], %s652_s8 }
 0x392   : > { %p759_p2 = pnand %p762_p1, %p968_p6 }
 0x394   : > { %863 = dma.done.wait (!%p759_p2), %s653_s9, 128  }
 0x395   : > { %865 = vsyncadd (!%p759_p2), %s653_s9, 4294967168  ;;  %p17_p3 = scmp.ge.s32.totalorder %s951_s30, 4   ;;  %s1106_s24 = smov %s872_s25 }
 0x396   : > { %s1107_s25 = smov %s876_s26  ;;  %s1108_s26 = smov %s962_s10 }
 0x397   : > { %s1109_s27 = smov %s951_s30  ;;  %19 = sbr.rel (!%p17_p3) target bundleno = 3 (0x3), region = 83 }
 0x39e   :  { %658 = vsyncpa [#allocation3], 1 }
 0x39f   :  { %660 = vsyncpa [#allocation3 + $0x1], 1 }

</bundles_post_ra>
